<compile_context>
chip_gen: v5e
topology: v5e:2x2
jax: 0.10.0
libtpu: 0.0.40
codegen_flags: <defaults>
</compile_context>

<pallas_src>
import functools
import math

import jax
import jax.numpy as jnp
from jax.experimental import pallas as pl
from jax.experimental.pallas import tpu as pltpu

_HALF_LOG_2PI = 0.5 * math.log(2.0 * math.pi)


def _round_up(v: int, m: int) -> int:
    return ((v + m - 1) // m) * m


def _vmem_config():
    """Generation-aware VMEM sizing: (per-tile budget, scoped limit, max rows)."""
    cap = None
    try:
        cap = getattr(pltpu.get_tpu_info(), "vmem_capacity_bytes", None)
    except Exception:
        cap = None
    if cap is None:
        cap = 64 * 1024 * 1024                       # conservative: v7x per-TC
    if cap >= 96 * 1024 * 1024:                      # v5e / v6e: 128 MiB physical
        return 48 * 1024 * 1024, 96 * 1024 * 1024, 2048
    return 24 * 1024 * 1024, 48 * 1024 * 1024, 1024  # v7x: 64 MiB physical


def _invariant_spec(shape, idx_map):
    """BlockSpec for a grid-invariant operand: single-buffered when supported
    (its index_map is constant, so a 2nd pipeline buffer is pure VMEM waste)."""
    buffered = getattr(pl, "Buffered", None)
    if buffered is not None:
        try:
            return pl.BlockSpec(shape, idx_map, pipeline_mode=buffered(1))
        except TypeError:
            pass
    return pl.BlockSpec(shape, idx_map)


def _choose_block_rows(n, row_bytes, fixed_bytes, budget, max_rows):
    """Largest batch tile (multiple of 8) whose working set fits the budget.

    row_bytes: single-buffer per-row footprint of batch-tiled operands (they
    are double-buffered). fixed_bytes: weight-like operands, counted with
    their actual buffer count (1x when Buffered(1)).
    """
    avail = max(budget - fixed_bytes, 2 * row_bytes * 8)
    tm = int(min(max_rows, avail // (2 * row_bytes)))
    tm = max(8, (tm // 8) * 8)
    tm = min(tm, _round_up(n, 8))
    # keep >= 2 grid steps so "parallel" can shard across v7x's two TensorCores
    tm = min(tm, max(8, _round_up(pl.cdiv(n, 2), 8)))
    return tm


# ---------------------------------------------------------------------------
# forward(): conditional mean  mn[i, :] = x[i, :] @ W + b
# ---------------------------------------------------------------------------
def _mean_kernel(x_ref, w_ref, b_ref, mn_ref):
    mn_ref[...] = (
        jnp.dot(x_ref[...], w_ref[...], preferred_element_type=jnp.float32)
        + b_ref[...]
    )


def cond_vae_forward(x, w, b, *, dtype=jnp.float32, max_block_rows=None,
                     col_tile=None):
    n, dx = x.shape
    dy = w.shape[1]
    budget, limit, auto_rows = _vmem_config()
    max_rows = max_block_rows if max_block_rows is not None else auto_rows
    esz = jnp.dtype(dtype).itemsize

    x = x.astype(dtype)
    w = w.astype(dtype)
    b = jnp.asarray(b).reshape(1, dy).astype(jnp.float32)

    # Column (dy) tiling only when the resident weight would eat > ~1/3 of the
    # scoped VMEM limit (matters on v7x's 64 MiB VMEM; usually n_col == 1).
    if col_tile is not None:
        tn = int(col_tile)
    elif esz * dx * dy > limit // 3:
        tn = max(128, (((limit // 3) // (esz * dx)) // 128) * 128)
        tn = min(tn, _round_up(dy, 128))
    else:
        tn = dy
    n_col = pl.cdiv(dy, tn)

    w_fixed = esz * dx * tn * (1 if n_col == 1 else 2)
    b_fixed = 4 * tn * (1 if n_col == 1 else 2)
    tm = _choose_block_rows(n, esz * dx + 4 * tn, w_fixed + b_fixed, budget, max_rows)
    n_row = pl.cdiv(n, tm)
    grid = (n_col, n_row)   # rows innermost: each W column tile is fetched once

    if n_col == 1:
        w_spec = _invariant_spec((dx, tn), lambda j, i: (0, 0))
        b_spec = _invariant_spec((1, tn), lambda j, i: (0, 0))
    else:
        w_spec = pl.BlockSpec((dx, tn), lambda j, i: (0, j))
        b_spec = pl.BlockSpec((1, tn), lambda j, i: (0, j))

    cost = pl.CostEstimate(
        flops=2 * n * dx * dy + n * dy,
        transcendentals=0,
        bytes_accessed=esz * n * dx * n_col + esz * dx * dy + 4 * dy + 4 * n * dy,
    )

    return pl.pallas_call(
        _mean_kernel,
        out_shape=jax.ShapeDtypeStruct((n, dy), jnp.float32),
        grid=grid,
        in_specs=[pl.BlockSpec((tm, dx), lambda j, i: (i, 0)), w_spec, b_spec],
        out_specs=pl.BlockSpec((tm, tn), lambda j, i: (i, j)),
        compiler_params=pltpu.CompilerParams(
            dimension_semantics=("parallel", "parallel"),
            vmem_limit_bytes=limit,
        ),
        cost_estimate=cost,
    )(x, w, b)


# ---------------------------------------------------------------------------
# kl(): kl[i] = log p_1(y_i | x_i) - log p_2(y_i | x_i)
#   kl[i] = -0.5 * sum_j (z1[i,j]^2 - z2[i,j]^2) + sum_j (ls2[j] - ls1[j])
# (the 0.5*log(2*pi) terms cancel; log_std terms are hoisted out of the
#  per-element reduction.)
# ---------------------------------------------------------------------------
def _kl_fused_kernel(x_ref, y_ref, wc_ref, bc_ref, lsc_ref, kl_ref, *, dy, tm):
    x = x_ref[...]
    y = y_ref[...].astype(jnp.float32)
    lsc = lsc_ref[...]                     # (1, 2*dy) = [log_std1 | log_std2], f32
    inv_std = jnp.exp(-lsc)                # single EUP eval per tile

    # One fused MXU call for both distributions' conditional means (f32 acc).
    mn = jnp.dot(x, wc_ref[...], preferred_element_type=jnp.float32) + bc_ref[...]

    z1 = (y - mn[:, :dy]) * inv_std[:, :dy]
    z2 = (y - mn[:, dy:]) * inv_std[:, dy:]

    q = jnp.sum(z1 * z1 - z2 * z2, axis=-1)                  # (tm,)
    c = jnp.sum(lsc[:, dy:] - lsc[:, :dy])                   # scalar
    # lane-dense store: full (1,1,tm) vreg rows, no masked column stores
    kl_ref[...] = (-0.5 * q + c).reshape(1, 1, tm)


def _kl_tiled_kernel(x_ref, y_ref, w1_ref, w2_ref, b1_ref, b2_ref,
                     ls1_ref, ls2_ref, kl_ref, acc_ref, *, dy, td, tm):
    j = pl.program_id(1)

    @pl.when(j == 0)
    def _():
        acc_ref[...] = jnp.zeros_like(acc_ref)

    x = x_ref[...]
    y = y_ref[...].astype(jnp.float32)
    ls1 = ls1_ref[...]
    ls2 = ls2_ref[...]
    mn1 = jnp.dot(x, w1_ref[...], preferred_element_type=jnp.float32) + b1_ref[...]
    mn2 = jnp.dot(x, w2_ref[...], preferred_element_type=jnp.float32) + b2_ref[...]
    z1 = (y - mn1) * jnp.exp(-ls1)
    z2 = (y - mn2) * jnp.exp(-ls2)

    # zero the contribution of padded lanes of a ragged final dy tile
    col = j * td + jax.lax.broadcasted_iota(jnp.int32, (1, td), 1)
    valid = col < dy
    diff = jnp.where(valid, z1 * z1 - z2 * z2, 0.0)
    cterm = jnp.where(valid, ls2 - ls1, 0.0)

    partial = -0.5 * jnp.sum(diff, axis=-1) + jnp.sum(cterm)     # (tm,)
    acc_ref[...] += partial.reshape(1, tm)

    @pl.when(j == pl.num_programs(1) - 1)
    def _():
        kl_ref[...] = acc_ref[...].reshape(1, 1, tm)


def fuse_kl_params(params_1, params_2, dtype=jnp.float32):
    """Pre-fuse the two distributions' parameters once (e.g. per parameter
    update) so repeated KL calls avoid the per-call concatenation."""
    w1, b1, ls1 = params_1
    w2, b2, ls2 = params_2
    wc = jnp.concatenate([jnp.asarray(w1), jnp.asarray(w2)], axis=1).astype(dtype)
    bc = jnp.concatenate([jnp.asarray(b1).reshape(1, -1),
                          jnp.asarray(b2).reshape(1, -1)], axis=1).astype(jnp.float32)
    lsc = jnp.concatenate([jnp.asarray(ls1).reshape(1, -1),
                           jnp.asarray(ls2).reshape(1, -1)], axis=1).astype(jnp.float32)
    return wc, bc, lsc


def cond_vae_kl(x, y, params_1=None, params_2=None, *, fused_params=None,
                dtype=jnp.float32, max_block_rows=None,
                force_tiled=False, col_tile=None):
    """Empirical KL between two conditional Gaussians, as in CondVAEDistribution.kl."""
    n, dx = x.shape
    dy = y.shape[1]
    budget, limit, auto_rows = _vmem_config()
    max_rows = max_block_rows if max_block_rows is not None else auto_rows
    esz = jnp.dtype(dtype).itemsize

    x = x.astype(dtype)
    y = y.astype(dtype)

    fused_w_bytes = esz * dx * 2 * dy
    use_fused = (fused_params is not None) or (
        not force_tiled and fused_w_bytes <= limit // 3)

    if use_fused:
        if fused_params is None:
            # TODO(synk): for repeated KL evaluations, pre-fuse once per
            # parameter update via fuse_kl_params() to skip this concat.
            fused_params = fuse_kl_params(params_1, params_2, dtype)
        wc, bc, lsc = fused_params
        wc = wc.astype(dtype)
        bc = bc.astype(jnp.float32)
        lsc = lsc.astype(jnp.float32)

        row_bytes = esz * (dx + dy) + 4
        fixed_bytes = esz * dx * 2 * dy + 4 * 2 * (2 * dy)   # single-buffered
        tm = _choose_block_rows(n, row_bytes, fixed_bytes, budget, max_rows)
        n_blk = pl.cdiv(n, tm)

        cost = pl.CostEstimate(
            flops=2 * n * dx * (2 * dy) + 8 * n * dy,
            transcendentals=2 * dy * n_blk,
            bytes_accessed=esz * (n * dx + n * dy + dx * 2 * dy)
            + 4 * (4 * dy + n_blk * tm),
        )

        kl3d = pl.pallas_call(
            functools.partial(_kl_fused_kernel, dy=dy, tm=tm),
            out_shape=jax.ShapeDtypeStruct((n_blk, 1, tm), jnp.float32),
            grid=(n_blk,),
            in_specs=[
                pl.BlockSpec((tm, dx), lambda i: (i, 0)),      # x tile
                pl.BlockSpec((tm, dy), lambda i: (i, 0)),      # y tile
                _invariant_spec((dx, 2 * dy), lambda i: (0, 0)),   # [W1|W2]
                _invariant_spec((1, 2 * dy), lambda i: (0, 0)),    # [b1|b2]
                _invariant_spec((1, 2 * dy), lambda i: (0, 0)),    # [ls1|ls2]
            ],
            out_specs=pl.BlockSpec((1, 1, tm), lambda i: (i, 0, 0)),
            compiler_params=pltpu.CompilerParams(
                dimension_semantics=("parallel",),
                vmem_limit_bytes=limit,
            ),
            cost_estimate=cost,
        )(x, y, wc, bc, lsc)
        return kl3d.reshape(-1)[:n]          # matches `kl.squeeze()` in PyTorch

    # ---- dy-tiled path: weights too large to sit resident (v7x 64 MiB VMEM) --
    w1, b1, ls1 = params_1
    w2, b2, ls2 = params_2
    w1 = jnp.asarray(w1).astype(dtype)
    w2 = jnp.asarray(w2).astype(dtype)
    b1 = jnp.asarray(b1).reshape(1, dy).astype(jnp.float32)
    b2 = jnp.asarray(b2).reshape(1, dy).astype(jnp.float32)
    ls1 = jnp.asarray(ls1).reshape(1, dy).astype(jnp.float32)
    ls2 = jnp.asarray(ls2).reshape(1, dy).astype(jnp.float32)

    if col_tile is not None:
        td = int(col_tile)
    else:
        max_td = (budget // 2) // (2 * 2 * esz * dx)    # W1+W2, double-buffered
        td = max(128, min(_round_up(dy, 128), (max_td // 128) * 128))
    n_col = pl.cdiv(dy, td)

    row_bytes = esz * (dx + td) + 4
    fixed_bytes = 2 * 2 * esz * dx * td + 2 * 4 * 4 * td
    tm = _choose_block_rows(n, row_bytes, fixed_bytes, budget, max_rows)
    n_row = pl.cdiv(n, tm)

    cost = pl.CostEstimate(
        flops=4 * n * dx * dy + 10 * n * dy,
        transcendentals=2 * dy * n_row,
        bytes_accessed=esz * (n * dx + n * dy + 2 * n_row * dx * dy)
        + 4 * (4 * dy + n_row * tm),
    )

    kl3d = pl.pallas_call(
        functools.partial(_kl_tiled_kernel, dy=dy, td=td, tm=tm),
        out_shape=jax.ShapeDtypeStruct((n_row, 1, tm), jnp.float32),
        grid=(n_row, n_col),                 # reduction (dy) axis last
        in_specs=[
            pl.BlockSpec((tm, dx), lambda i, j: (i, 0)),   # x tile
            pl.BlockSpec((tm, td), lambda i, j: (i, j)),   # y column tile
            pl.BlockSpec((dx, td), lambda i, j: (0, j)),   # W1 column tile
            pl.BlockSpec((dx, td), lambda i, j: (0, j)),   # W2 column tile
            pl.BlockSpec((1, td), lambda i, j: (0, j)),    # b1
            pl.BlockSpec((1, td), lambda i, j: (0, j)),    # b2
            pl.BlockSpec((1, td), lambda i, j: (0, j)),    # log_std1
            pl.BlockSpec((1, td), lambda i, j: (0, j)),    # log_std2
        ],
        out_specs=pl.BlockSpec((1, 1, tm), lambda i, j: (i, 0, 0)),
        scratch_shapes=[pltpu.VMEM((1, tm), jnp.float32)],
        compiler_params=pltpu.CompilerParams(
            dimension_semantics=("parallel", "arbitrary"),
            vmem_limit_bytes=limit,
        ),
        cost_estimate=cost,
    )(x, y, w1, w2, b1, b2, ls1, ls2)
    return kl3d.reshape(-1)[:n]


# ---------------------------------------------------------------------------
# Pure-JAX reference for validation
# ---------------------------------------------------------------------------
def _ref_log_prob(x, y, w, b, ls):
    mn = x @ w + b
    z = (y - mn) / jnp.exp(ls)
    return jnp.sum(-0.5 * z * z - ls - _HALF_LOG_2PI, axis=-1)


# TODO(synk): sample()/form_*_sample()/sample_to()/r_params()/s_params() are
# abstract or pure device-management in the PyTorch class and have no Pallas
# equivalent (device placement is handled by JAX outside the kernel).

if __name__ == "__main__":
    N, DX, DY = 20, 16, 32  # n_smps, d_x, d_y (N deliberately not a tile multiple)

    key = jax.random.PRNGKey(0)
    kx, ky, k1w, k1b, k1s, k2w, k2b, k2s = jax.random.split(key, 8)

    x = jax.random.normal(kx, (N, DX), dtype=jnp.float32)
    y = jax.random.normal(ky, (N, DY), dtype=jnp.float32)  # compact == standard sample

    w1 = 0.1 * jax.random.normal(k1w, (DX, DY), dtype=jnp.float32)
    b1 = 0.1 * jax.random.normal(k1b, (1, DY), dtype=jnp.float32)
    ls1 = 0.05 * jax.random.normal(k1s, (1, DY), dtype=jnp.float32)
    w2 = 0.1 * jax.random.normal(k2w, (DX, DY), dtype=jnp.float32)
    b2 = 0.1 * jax.random.normal(k2b, (1, DY), dtype=jnp.float32)
    ls2 = 0.05 * jax.random.normal(k2s, (1, DY), dtype=jnp.float32)

    mn_ref = x @ w1 + b1
    kl_ref = _ref_log_prob(x, y, w1, b1, ls1) - _ref_log_prob(x, y, w2, b2, ls2)

    # 1) forward, small tiles -> multi-block grid with ragged final row tile
    mn = jax.block_until_ready(cond_vae_forward(x, w1, b1, max_block_rows=8))
    assert mn.shape == (N, DY)
    assert jnp.allclose(mn, mn_ref, atol=1e-5, rtol=1e-5)

    # 2) fused KL, small tiles, lane-dense output
    kl = jax.block_until_ready(
        cond_vae_kl(x, y, (w1, b1, ls1), (w2, b2, ls2), max_block_rows=8))
    assert kl.shape == (N,)
    assert jnp.allclose(kl, kl_ref, atol=1e-4, rtol=1e-4)

    # 3) auto-sized path, with the concat hoisted out of the per-call path
    fused = fuse_kl_params((w1, b1, ls1), (w2, b2, ls2))
    kl2 = jax.block_until_ready(cond_vae_kl(x, y, fused_params=fused))
    assert jnp.allclose(kl2, kl_ref, atol=1e-4, rtol=1e-4)
    mn2 = jax.block_until_ready(cond_vae_forward(x, w1, b1))
    assert jnp.allclose(mn2, mn_ref, atol=1e-5, rtol=1e-5)

    # 4) bf16 input path (post-matmul math stays f32)
    mn_bf = jax.block_until_ready(cond_vae_forward(x, w1, b1, dtype=jnp.bfloat16))
    assert jnp.allclose(mn_bf, mn_ref, atol=5e-2, rtol=5e-2)
    kl_bf = jax.block_until_ready(
        cond_vae_kl(x, y, (w1, b1, ls1), (w2, b2, ls2), dtype=jnp.bfloat16))
    assert jnp.allclose(kl_bf, kl_ref, atol=0.5, rtol=0.1)

    # 5) dy-tiled weight path (the v7x large-weight path), forced at a small
    #    shape with a ragged final column tile to exercise the lane masking
    N2, DY2 = 24, 160
    kx2, ky2, kw3, kw4 = jax.random.split(jax.random.PRNGKey(1), 4)
    x2 = jax.random.normal(kx2, (N2, DX), dtype=jnp.float32)
    y2 = jax.random.normal(ky2, (N2, DY2), dtype=jnp.float32)
    w3 = 0.1 * jax.random.normal(kw3, (DX, DY2), dtype=jnp.float32)
    w4 = 0.1 * jax.random.normal(kw4, (DX, DY2), dtype=jnp.float32)
    b3 = jnp.full((1, DY2), 0.05, jnp.float32)
    b4 = jnp.full((1, DY2), -0.05, jnp.float32)
    ls3 = jnp.full((1, DY2), 0.02, jnp.float32)
    ls4 = jnp.full((1, DY2), -0.02, jnp.float32)

    kl_t = jax.block_until_ready(
        cond_vae_kl(x2, y2, (w3, b3, ls3), (w4, b4, ls4),
                    force_tiled=True, col_tile=128))
    kl_t_ref = _ref_log_prob(x2, y2, w3, b3, ls3) - _ref_log_prob(x2, y2, w4, b4, ls4)
    assert kl_t.shape == (N2,)
    assert jnp.allclose(kl_t, kl_t_ref, atol=1e-4, rtol=1e-4)

    mn_t = jax.block_until_ready(cond_vae_forward(x2, w3, b3, col_tile=128))
    assert jnp.allclose(mn_t, x2 @ w3 + b3, atol=1e-5, rtol=1e-5)

    print("KERNEL_OK")
</pallas_src>

<mosaic_0001>
module attributes {stable_mosaic.version = 11 : i64} {
  func.func @_mean_kernel(%arg0: i32, %arg1: i32, %arg2: memref<8x16xf32, #tpu.memory_space<vmem>>, %arg3: memref<16x32xf32, #tpu.memory_space<vmem>>, %arg4: memref<1x32xf32, #tpu.memory_space<vmem>>, %arg5: memref<8x32xf32, #tpu.memory_space<vmem>>) attributes {dimension_semantics = [#tpu.dimension_semantics<parallel>, #tpu.dimension_semantics<parallel>], iteration_bounds = array<i64: 1, 3>, scalar_prefetch = 0 : i64, scratch_operands = 0 : i64, tpu.core_type = #tpu.core_type<tc>, window_params = [{transform_indices = @transform_0, window_bounds = array<i64: 8, 16>}, {pipeline_mode = #tpu.pipeline_mode<synchronous>, transform_indices = @transform_1, window_bounds = array<i64: 16, 32>}, {pipeline_mode = #tpu.pipeline_mode<synchronous>, transform_indices = @transform_2, window_bounds = array<i64: 1, 32>}, {transform_indices = @transform_3, window_bounds = array<i64: 8, 32>}]} {
    %c0 = arith.constant 0 : index
    %c0_0 = arith.constant 0 : index
    %0 = vector.load %arg2[%c0, %c0_0] : memref<8x16xf32, #tpu.memory_space<vmem>>, vector<8x16xf32>
    %c0_1 = arith.constant 0 : index
    %c0_2 = arith.constant 0 : index
    %1 = vector.load %arg3[%c0_1, %c0_2] : memref<16x32xf32, #tpu.memory_space<vmem>>, vector<16x32xf32>
    %cst = arith.constant dense<0.000000e+00> : vector<8x32xf32>
    %2 = tpu.matmul %0, %1, %cst {dimension_numbers = #tpu.dot_dimension_numbers<[1], [0], [0], [1], [0, 0, 1, 1], [], []>} : vector<8x16xf32>, vector<16x32xf32>, vector<8x32xf32> -> vector<8x32xf32>
    %c0_3 = arith.constant 0 : index
    %c0_4 = arith.constant 0 : index
    %3 = vector.load %arg4[%c0_3, %c0_4] : memref<1x32xf32, #tpu.memory_space<vmem>>, vector<1x32xf32>
    %4 = vector.broadcast %3 : vector<1x32xf32> to vector<8x32xf32>
    %5 = arith.addf %2, %4 : vector<8x32xf32>
    %c0_5 = arith.constant 0 : index
    %c0_6 = arith.constant 0 : index
    %6 = vector.load %arg5[%c0_5, %c0_6] : memref<8x32xf32, #tpu.memory_space<vmem>>, vector<8x32xf32>
    tpu.vector_store %arg5[%c0_5, %c0_6], %5 {strides = array<i32>} : memref<8x32xf32, #tpu.memory_space<vmem>>, vector<8x32xf32>,
    return
  }
  func.func @transform_0(%arg0: i32, %arg1: i32) -> (i32, i32) {
    %c0_i32 = arith.constant 0 : i32
    %c0_i32_0 = arith.constant 0 : i32
    return %arg1, %c0_i32 : i32, i32
  }
  func.func @transform_1(%arg0: i32, %arg1: i32) -> (i32, i32) {
    %c0_i32 = arith.constant 0 : i32
    %c0_i32_0 = arith.constant 0 : i32
    %c0_i32_1 = arith.constant 0 : i32
    return %c0_i32, %c0_i32_0 : i32, i32
  }
  func.func @transform_2(%arg0: i32, %arg1: i32) -> (i32, i32) {
    %c0_i32 = arith.constant 0 : i32
    %c0_i32_0 = arith.constant 0 : i32
    %c0_i32_1 = arith.constant 0 : i32
    return %c0_i32, %c0_i32_0 : i32, i32
  }
  func.func @transform_3(%arg0: i32, %arg1: i32) -> (i32, i32) {
    %c0_i32 = arith.constant 0 : i32
    return %arg1, %arg0 : i32, i32
  }
}

</mosaic_0001>

<bundles_post_ra>
// kernel: tpu_custom_call.1
= control target key start
LH: loop header
LB: loop body
LE: loop exit
PB: predicated region body
PF: predicated region fallthrough
CT: control target
= control target key end

     0   :  { %8 = vsyncpa [#allocation3], 0  ;;  %s572_s0 = inlined_call_operand.vmem [shape: f32[20,16], index: 0, kind: input, shape index: {}]   ;;  %s573_s1 = inlined_call_operand.vmem [shape: f32[16,32], index: 1, kind: input, shape index: {}]   ;;  %s574_s2 = inlined_call_operand.vmem [shape: f32[1,32], index: 2, kind: input, shape index: {}]   ;;  %s575_s3 = inlined_call_operand.hbm [shape: f32[20,32], index: 3, kind: output, shape index: {}]  }
   0x1   :  { %10 = vsyncpa [#allocation3 + $0x1], 0  ;;  %s466_s12 = smov 0   ;;  %s468_s13 = smov 0  }
   0x2   :  { %s470_s14 = smov 0   ;;  %s472_s15 = smov 0  }
   0x3   :  { %s474_s16 = smov 0   ;;  %s476_s17 = smov 0  }
   0x4 LB: > { %s298_s18 = sadd.s32 4294967295, %s444_s17   ;;  %s299_s19 = sadd.s32 4294967294, %s444_s17   ;;  %s444_s17 = sphi %s476_s17, %s16_s17   ;;  %s440_s16 = sphi %s474_s16, %s582_s16   ;;  %s436_s15 = sphi %s472_s15, %s581_s15   ;;  %s432_s14 = sphi %s470_s14, %s580_s14   ;;  %s428_s13 = sphi %s468_s13, %s579_s13   ;;  %s424_s12 = sphi %s466_s12, %s578_s12  }
   0x5   : > { %s25_s20 = sadd.s32 1, %s440_s16  ;;  %s105_s21 = sadd.s32 1, %s432_s14 }
   0x6   : > { %p26_p0 = scmp.ge.s32.totalorder %s25_s20, 3  ;;  %p115_p1 = scmp.ne.s32.totalorder %s432_s14, %s428_s13 }
   0x7   : > { %p116_p2 = scmp.eq.s32.totalorder %s298_s18, 2  ;;  %p121_p3 = scmp.ne.s32.totalorder %s428_s13, %s424_s12 }
   0x8   : > { %s584_s20 = smov (%p26_p0, %s25_s20), 0  ;;  %p122_p5 = scmp.eq.s32.totalorder %s299_s19, 2 }
   0x9   : > { %p506_p4 = por %p116_p2, %p115_p1  ;;  %s100_s23 = ssub.s32 %s440_s16, %s584_s20 }
   0xa   : > { %p302_p6 = scmp.ge.s32.totalorder %s444_s17, 1  ;;  %p103_p7 = scmp.eq.s32.totalorder %s100_s23, 0 }
   0xb   : > { %p513_p8 = por %p122_p5, %p121_p3  ;;  %p153_p9 = scmp.lt.s32.totalorder %s444_s17, 4 }
   0xc   : > { %s519_s25 = scalar_select %p103_p7, %s432_s14, %s105_s21  }
   0xd   : > { %p154_p10 = pnand %p302_p6, %p153_p9 }
   0xe   : > { %p176_p11 = scmp.lt.s32.totalorder (!%p154_p10), %s436_s15, 2  ;;  %s173_s8 = sand.u32 (!%p154_p10), 1, %s428_s13  }
   0xf   : > { %157 = sbr.rel (%p154_p10) target bundleno = 156 (0x9c), region = 32  ;;  %s303_s9 = sshll.u32 (!%p154_p10), %s173_s8, 3 }
  0x10   : > { %s307_s10 = sshll.u32 (!%p154_p10), %s436_s15, 3  ;;  %s175_s26 = scalar_lea.vmem (!%p154_p10), [#allocation2], %s303_s9 }
  0x11   : > { %s225_s19 = scalar_lea.hbm (!%p154_p10), %s575_s3, %s307_s10  ;;  %s227_s27 = sshll.u32 (!%p154_p10), %s175_s26, 4  ;;  %s228_s27 = int_to_ptr.vmem [resolvable:$true] %s227_s27 }
  0x12   : > { %s229_s28 = sshll.u32 (!%p154_p10), %s225_s19, 4  ;;  %s214_s29 = scalar_lea.sflag (!%p154_p10), [#allocation3], %s173_s8  ;;  %s230_s28 = int_to_ptr.hbm [resolvable:$true] %s229_s28 }
  0x13   : > { %s386_s6 = scalar_lea.hbm (!%p154_p10), %s575_s3, 24 }
  0x14   : > { %v182_v0 = vld [vmem:[%s573_s1 + $0x8] sm:$0xff]  ;;  %v181_v1 = vld [vmem:[%s573_s1] sm:$0xff]  ;;  %s177_s30 = scalar_select %p176_p11, %s436_s15, 2  ;;  %vm187_vm0 = vcmask 130048   ;;  %vm211_vm1 = vcmask 261120  }
  0x15   : > { %205 = vmatpush.msra.mxu0 %v182_v0  ;;  %v365_v3 = vld [vmem:[%s574_s2] ss:$0 sm:$0xff]  ;;  %s380_s15 = sshra.s32 %s230_s28, 4  ;;  %s381_s15 = int_to_ptr.hbm [resolvable:$true] %s380_s15 }
  0x16   : > { %s304_s4 = sshll.u32 %s177_s30, 3  ;;  %s382_s30 = scalar_lea.hbm %s381_s15, 8 }
  0x17   : > { %206 = vmatpush.msra.mxu0 %v181_v1  ;;  %s179_s7 = scalar_lea.vmem %s572_s0, %s304_s4  ;;  %p383_p12 = scmp.ne.s32.totalorder %s381_s15, %s382_s30 }
  0x18   : > { %v180_v2 = vld [vmem:[%s179_s7] sm:$0xff]  ;;  %p387_p1 = scmp.lt.s32.totalorder %s381_s15, %s575_s3  ;;  %p388_p2 = scmp.lt.s32.totalorder %s386_s6, %s382_s30 }
  0x19   : > { %305 = vmatmul.msk.f32.vlgmr.msra.gmra.mxu0 %vm187_vm0, %v180_v2  ;;  %p384_p13 = pnand %p383_p12, %p506_p4 }
  0x1a   : > { %p389_p3 = por %p388_p2, %p387_p1 }
  0x1b   : > { %p385_p0 = pneg %p384_p13 }
  0x1d   : > { %p390_p5 = pnand %p389_p3, %p385_p0 }
  0x96   : > { %v208_v4 = vpop.f32.mrf.mxu0 }
  0x97   : > { %v209_v5 = vadd.f32 %v365_v3, %v208_v4 }
  0x99   : > { %212 = vst.msk [vmem:[%s175_s26] sm:$0xff] %vm211_vm1, %v209_v5 }
  0x9a   : > { %393 = shalt.err (!%p390_p5)
}
  0x9b   : > { %310 = dma.vmem_to_hbm [thread:$0]  (%p506_p4), %s228_s27, 128, %s230_s28, %s214_s29  }
  0x9c PF: > { %p316_p6 = scmp.ge.s32.totalorder %s444_s17, 2  ;;  %s241_s8 = sand.u32 1, %s424_s12  }
  0x9d   : > { %s242_s10 = scalar_lea.sflag [#allocation3], %s241_s8 }
  0x9e   : > { %p313_p7 = pnand %p316_p6, %p513_p8 }
  0xa0   : > { %p314_p9 = pneg %p313_p7 }
  0xa2   : > { %419 = dma.done.wait (%p314_p9), %s242_s10, 128  }
  0xa3   : > { %421 = vsyncadd (%p314_p9), %s242_s10, 4294967168  ;;  %s16_s17 = sadd.s32 1, %s444_s17   ;;  %s578_s12 = smov %s428_s13 }
  0xa4   : > { %p13_p10 = scmp.ge.s32.totalorder %s16_s17, 5   ;;  %s579_s13 = smov %s432_s14 }
  0xa5   : > { %s580_s14 = smov %s519_s25  ;;  %s581_s15 = smov %s440_s16 }
  0xa6   : > { %s582_s16 = smov %s584_s20  ;;  %15 = sbr.rel (!%p13_p10) target bundleno = 4 (0x4), region = 67 }
  0xab   :  { %248 = vsyncpa [#allocation3], 1 }
  0xac   :  { %250 = vsyncpa [#allocation3 + $0x1], 1 }

</bundles_post_ra>
